<compile_context>
chip_gen: v6e
topology: v6e:2x2x1
jax: 0.10.0
libtpu: 0.0.40
codegen_flags: <defaults>
</compile_context>

<pallas_src>
import functools
import itertools
import math

import jax
import jax.numpy as jnp
from jax.experimental import pallas as pl
from jax.experimental.pallas import tpu as pltpu

# --------------------------------------------------------------------------- config
# Scaled-down version of kornia's LoFTR default_cfg (identical structure, smaller
# dims so the synthetic example runs quickly).  thr / border_rm are relaxed so that
# randomly initialized weights still yield >= 1 coarse match.
CFG = {
    'backbone_type': 'ResNetFPN',
    'resolution': (8, 2),
    'fine_window_size': 5,
    'fine_concat_coarse_feat': True,
    'resnetfpn': {'initial_dim': 16, 'block_dims': [16, 24, 32]},
    'coarse': {'d_model': 32, 'd_ffn': 32, 'nhead': 4,
               'layer_names': ['self', 'cross'] * 4,
               'attention': 'linear', 'temp_bug_fix': False},
    'match_coarse': {'thr': 0.0, 'border_rm': 0, 'match_type': 'dual_softmax',
                     'dsmax_temperature': 0.1},
    'fine': {'d_model': 16, 'd_ffn': 16, 'nhead': 4,
             'layer_names': ['self', 'cross'], 'attention': 'linear'},
}

_BN_EPS = 1e-5
# TODO(synk): eval BatchNorm folded assuming default running stats / affine params
#             (demo with random weights); real pretrained weights need per-channel
#             scale=gamma/sqrt(var+eps), bias=beta-mean*scale folded here instead.
_BN_SCALE = float(1.0 / math.sqrt(1.0 + _BN_EPS))


def _vmem_limit_bytes():
    try:
        cap = int(pltpu.get_tpu_info().vmem_capacity_bytes)
        # ~3/4 of physical VMEM: ~96 MiB on v5e/v6e (128 MiB), ~48 MiB on v7x (64 MiB)
        return max(32 * 1024 * 1024, min(cap * 3 // 4, 96 * 1024 * 1024))
    except Exception:
        return 32 * 1024 * 1024


VMEM_LIMIT = _vmem_limit_bytes()


def _round_up(x, m):
    return ((x + m - 1) // m) * m


def _pick_tile(n, max_tile):
    """Tile size + padded extent for one axis.  max_tile must be a multiple of 128."""
    n = max(int(n), 1)
    if n <= max_tile:
        return n, n                       # full-dim block: always layout-legal
    return max_tile, _round_up(n, max_tile)


def _mosaic(sem):
    return pltpu.CompilerParams(dimension_semantics=sem, vmem_limit_bytes=VMEM_LIMIT)


# ------------------------------------------------------------------- pallas kernels
# --- tiled MXU matmul (conv / im2col path) with fused BN-scale + activation --------
def _epilogue(y, scale, act):
    if scale is not None:
        y = y * scale
    if act == 'relu':
        y = jnp.maximum(y, 0.0)
    elif act == 'leaky':
        y = jnp.where(y >= 0.0, y, 0.01 * y)
    return y


def _matmul_k1_kernel(a_ref, b_ref, o_ref, *, scale, act):
    y = jnp.dot(a_ref[...], b_ref[...], preferred_element_type=jnp.float32)
    o_ref[...] = _epilogue(y, scale, act).astype(o_ref.dtype)


def _matmul_acc_kernel(a_ref, b_ref, o_ref, acc_ref, *, scale, act):
    @pl.when(pl.program_id(2) == 0)
    def _init():
        acc_ref[...] = jnp.zeros_like(acc_ref)

    acc_ref[...] += jnp.dot(a_ref[...], b_ref[...],
                            preferred_element_type=jnp.float32)

    @pl.when(pl.program_id(2) == pl.num_programs(2) - 1)
    def _store():
        o_ref[...] = _epilogue(acc_ref[...], scale, act).astype(o_ref.dtype)


@functools.partial(jax.jit, static_argnames=('scale', 'act', 'out_dtype'))
def pallas_matmul(a, b_kn, *, scale=None, act=None, out_dtype=jnp.float32):
    """a: (M, K), b_kn: (K, N) in (in,out) layout.  bf16 MXU operands, f32 acc,
    fused scale+activation epilogue, out_dtype-typed store (bf16 between convs)."""
    M, K = a.shape
    N = b_kn.shape[1]
    if M == 0:
        return jnp.zeros((0, N), out_dtype)
    tm = min(_round_up(M, 16), 512)
    tn = min(_round_up(N, 128), 256)
    Mp = _round_up(M, tm)
    Np = _round_up(N, tn)
    if K <= 512:
        Kp = tk = _round_up(K, 16)        # keep small conv K nearly un-padded
    else:
        tk = 256
        Kp = _round_up(K, tk)
    a_p = jnp.pad(a, ((0, Mp - M), (0, Kp - K))).astype(jnp.bfloat16)
    b_p = jnp.pad(b_kn, ((0, Kp - K), (0, Np - N))).astype(jnp.bfloat16)

    if Kp // tk == 1:                     # no accumulator scratch / init / extra copy
        out = pl.pallas_call(
            functools.partial(_matmul_k1_kernel, scale=scale, act=act),
            grid=(Mp // tm, Np // tn),
            in_specs=[pl.BlockSpec((tm, Kp), lambda i, j: (i, 0)),
                      pl.BlockSpec((Kp, tn), lambda i, j: (0, j))],
            out_specs=pl.BlockSpec((tm, tn), lambda i, j: (i, j)),
            out_shape=jax.ShapeDtypeStruct((Mp, Np), out_dtype),
            compiler_params=_mosaic(("parallel", "parallel")),
        )(a_p, b_p)
    else:
        out = pl.pallas_call(
            functools.partial(_matmul_acc_kernel, scale=scale, act=act),
            grid=(Mp // tm, Np // tn, Kp // tk),
            in_specs=[pl.BlockSpec((tm, tk), lambda i, j, k: (i, k)),
                      pl.BlockSpec((tk, tn), lambda i, j, k: (k, j))],
            out_specs=pl.BlockSpec((tm, tn), lambda i, j, k: (i, j)),
            out_shape=jax.ShapeDtypeStruct((Mp, Np), out_dtype),
            scratch_shapes=[pltpu.VMEM((tm, tn), jnp.float32)],
            compiler_params=_mosaic(("parallel", "parallel", "arbitrary")),
        )(a_p, b_p)
    return out[:M, :N]


# --- fused linear: (x1@W1 [+ x2@W2]) [+bias] [ReLU] [LayerNorm] [+residual] --------
def _linear_fused_kernel(*refs, n_x, has_bias, has_ln, has_res, act):
    o_ref = refs[-1]
    y = jnp.dot(refs[0][...], refs[1][...], preferred_element_type=jnp.float32)
    idx = 2
    if n_x == 2:
        y = y + jnp.dot(refs[2][...], refs[3][...], preferred_element_type=jnp.float32)
        idx = 4
    if has_bias:
        y = y + refs[idx][...]
        idx += 1
    if act == 'relu':
        y = jnp.maximum(y, 0.0)
    if has_ln:
        g = refs[idx][...]
        b = refs[idx + 1][...]
        idx += 2
        mu = jnp.mean(y, axis=-1, keepdims=True)
        var = jnp.mean(jnp.square(y - mu), axis=-1, keepdims=True)
        y = (y - mu) * jax.lax.rsqrt(var + 1e-5) * g + b
    if has_res:
        y = y + refs[idx][...]
        idx += 1
    o_ref[...] = y.astype(o_ref.dtype)


def _linear_impl(xs, ws, bias, gamma, beta, residual, act, out_dtype):
    lead = xs[0].shape[:-1]
    N = ws[0].shape[1]
    M = 1
    for d in lead:
        M *= int(d)
    if M == 0:
        return jnp.zeros((*lead, N), out_dtype)
    tm = min(_round_up(M, 16), 512)
    Mp = _round_up(M, tm)

    inputs, specs = [], []
    for x, w in zip(xs, ws):
        K = x.shape[-1]
        x2 = x.reshape(M, K)
        xp = x2 if Mp == M else jnp.pad(x2, ((0, Mp - M), (0, 0)))
        inputs += [xp.astype(jnp.bfloat16), w.astype(jnp.bfloat16)]
        specs += [pl.BlockSpec((tm, K), lambda i: (i, 0)),
                  pl.BlockSpec((K, N), lambda i: (0, 0))]
    if bias is not None:
        inputs.append(bias.reshape(1, N).astype(jnp.float32))
        specs.append(pl.BlockSpec((1, N), lambda i: (0, 0)))
    if gamma is not None:
        inputs += [gamma.reshape(1, N).astype(jnp.float32),
                   beta.reshape(1, N).astype(jnp.float32)]
        specs += [pl.BlockSpec((1, N), lambda i: (0, 0)),
                  pl.BlockSpec((1, N), lambda i: (0, 0))]
    if residual is not None:
        r2 = residual.reshape(M, N).astype(jnp.float32)
        rp = r2 if Mp == M else jnp.pad(r2, ((0, Mp - M), (0, 0)))
        inputs.append(rp)
        specs.append(pl.BlockSpec((tm, N), lambda i: (i, 0)))

    kern = functools.partial(_linear_fused_kernel, n_x=len(xs),
                             has_bias=bias is not None, has_ln=gamma is not None,
                             has_res=residual is not None, act=act)
    out = pl.pallas_call(
        kern, grid=(Mp // tm,), in_specs=specs,
        out_specs=pl.BlockSpec((tm, N), lambda i: (i, 0)),
        out_shape=jax.ShapeDtypeStruct((Mp, N), out_dtype),
        compiler_params=_mosaic(("parallel",)),
    )(*inputs)
    return out[:M].reshape(*lead, N)


@functools.partial(jax.jit, static_argnames=('act', 'out_dtype'))
def pallas_linear(x, w, *, bias=None, gamma=None, beta=None, residual=None,
                  act=None, out_dtype=jnp.float32):
    return _linear_impl([x], [w], bias, gamma, beta, residual, act, out_dtype)


@functools.partial(jax.jit, static_argnames=('act', 'out_dtype'))
def pallas_linear2(x1, w1, x2, w2, *, bias=None, gamma=None, beta=None, residual=None,
                   act=None, out_dtype=jnp.float32):
    return _linear_impl([x1, x2], [w1, w2], bias, gamma, beta, residual, act, out_dtype)


# --- linear attention: tiled KV accumulation + tiled output, block-diag head mask --
def _attn_kv_kernel(k_ref, v_ref, kv_ref, ks_ref, *, tlk, lk_valid):
    i = pl.program_id(1)
    kf = k_ref[0].astype(jnp.float32)                 # (tlk, HD) f32 for elu (v5e VPU)
    kp = jax.nn.elu(kf) + 1.0
    if lk_valid is not None:
        rows = jax.lax.broadcasted_iota(jnp.int32, kp.shape, 0) + i * tlk
        kp = jnp.where(rows < lk_valid, kp, 0.0)

    @pl.when(i == 0)
    def _init():
        kv_ref[...] = jnp.zeros_like(kv_ref)
        ks_ref[...] = jnp.zeros_like(ks_ref)

    kv_ref[0] += jax.lax.dot_general(kp.astype(jnp.bfloat16), v_ref[0],
                                     (((0,), (0,)), ((), ())),
                                     preferred_element_type=jnp.float32)   # (HD, HD)
    ks_ref[0] += jnp.sum(kp, axis=0, keepdims=True)                        # (1, HD)


def _attn_out_kernel(q_ref, kv_ref, ks_ref, bd_ref, o_ref, *, eps):
    qp = jax.nn.elu(q_ref[0].astype(jnp.float32)) + 1.0                    # (tlq, HD)
    bd = bd_ref[...]                                                       # (HD, HD)
    kv = kv_ref[0] * bd                                                    # per-head mask
    denom = jnp.dot(qp * ks_ref[0], bd, preferred_element_type=jnp.float32)
    z = pl.reciprocal(denom + eps, approx=True)                            # EUP slot
    out = jnp.dot(qp.astype(jnp.bfloat16), kv.astype(jnp.bfloat16),
                  preferred_element_type=jnp.float32)
    o_ref[0] = out * z


@functools.partial(jax.jit, static_argnames=('nhead',))
def pallas_linear_attention(q, k, v, *, nhead):
    """q,k,v: (B, L, nhead*dim) (bf16 ok).  Per-head handling via a block-diagonal
    head mask so KV and Q@KV are two lane-dense 2-D MXU matmuls (no per-head loop)."""
    B, Lq, HD = q.shape
    Lk = k.shape[1]
    dim = HD // nhead
    head = jnp.arange(HD, dtype=jnp.int32) // dim
    bd = (head[:, None] == head[None, :]).astype(jnp.float32)

    tlk, Lkp = _pick_tile(Lk, 512)
    tlq, Lqp = _pick_tile(Lq, 512)
    qb = (q if Lqp == Lq else jnp.pad(q, ((0, 0), (0, Lqp - Lq), (0, 0)))).astype(jnp.bfloat16)
    kb = (k if Lkp == Lk else jnp.pad(k, ((0, 0), (0, Lkp - Lk), (0, 0)))).astype(jnp.bfloat16)
    vb = (v if Lkp == Lk else jnp.pad(v, ((0, 0), (0, Lkp - Lk), (0, 0)))).astype(jnp.bfloat16)

    kv, ks = pl.pallas_call(
        functools.partial(_attn_kv_kernel, tlk=tlk,
                          lk_valid=(Lk if Lkp > Lk else None)),
        grid=(B, Lkp // tlk),
        in_specs=[pl.BlockSpec((1, tlk, HD), lambda b, i: (b, i, 0)),
                  pl.BlockSpec((1, tlk, HD), lambda b, i: (b, i, 0))],
        out_specs=[pl.BlockSpec((1, HD, HD), lambda b, i: (b, 0, 0)),
                   pl.BlockSpec((1, 1, HD), lambda b, i: (b, 0, 0))],
        out_shape=[jax.ShapeDtypeStruct((B, HD, HD), jnp.float32),
                   jax.ShapeDtypeStruct((B, 1, HD), jnp.float32)],
        compiler_params=_mosaic(("parallel", "arbitrary")),
    )(kb, vb)

    out = pl.pallas_call(
        functools.partial(_attn_out_kernel, eps=1e-6),
        grid=(B, Lqp // tlq),
        in_specs=[pl.BlockSpec((1, tlq, HD), lambda b, i: (b, i, 0)),
                  pl.BlockSpec((1, HD, HD), lambda b, i: (b, 0, 0)),
                  pl.BlockSpec((1, 1, HD), lambda b, i: (b, 0, 0)),
                  pl.BlockSpec((HD, HD), lambda b, i: (0, 0))],
        out_specs=pl.BlockSpec((1, tlq, HD), lambda b, i: (b, i, 0)),
        out_shape=jax.ShapeDtypeStruct((B, Lqp, HD), jnp.float32),
        compiler_params=_mosaic(("parallel", "parallel")),
    )(qb, kv, ks, bd)
    return out[:, :Lq]


# --- tiled similarity + 1/temperature + dual-softmax (two gridded passes) ----------
def _sim_colstats_kernel(f0_ref, f1_ref, sim_ref, cs_ref, *, scale, tl, ts,
                         l_valid, s_valid):
    j = pl.program_id(1)
    i = pl.program_id(2)
    sim = jax.lax.dot_general(f0_ref[0], f1_ref[0], (((1,), (1,)), ((), ())),
                              preferred_element_type=jnp.float32) * scale   # (tl, ts)
    if l_valid is not None:
        rows = jax.lax.broadcasted_iota(jnp.int32, sim.shape, 0) + i * tl
        sim = jnp.where(rows < l_valid, sim, -1e30)
    if s_valid is not None:
        cols = jax.lax.broadcasted_iota(jnp.int32, sim.shape, 1) + j * ts
        sim = jnp.where(cols < s_valid, sim, -1e30)
    sim_ref[0] = sim

    m_tile = jnp.max(sim, axis=0, keepdims=True)                            # (1, ts)

    @pl.when(i == 0)
    def _init():
        cs_ref[0, 0:1, :] = jnp.full_like(m_tile, -1e30)
        cs_ref[0, 1:2, :] = jnp.zeros_like(m_tile)

    m_old = cs_ref[0, 0:1, :]
    s_old = cs_ref[0, 1:2, :]
    m_new = jnp.maximum(m_old, m_tile)
    s_new = s_old * jnp.exp(m_old - m_new) + \
        jnp.sum(jnp.exp(sim - m_new), axis=0, keepdims=True)
    cs_ref[0, 0:1, :] = m_new
    cs_ref[0, 1:2, :] = s_new


def _dual_softmax_kernel(sim_ref, cs_ref, o_ref):
    sim = sim_ref[0]                                                        # (tl, S)
    cmax = cs_ref[0, 0:1, :]
    csum = cs_ref[0, 1:2, :]
    rmax = jnp.max(sim, axis=1, keepdims=True)
    pr = jnp.exp(sim - rmax)
    rsum = jnp.sum(pr, axis=1, keepdims=True)
    o_ref[0] = (pr / rsum) * (jnp.exp(sim - cmax) / csum)


@functools.partial(jax.jit, static_argnames=('scale',))
def pallas_sim_dual_softmax(f0, f1, *, scale):
    """conf = softmax(sim, axis=L) * softmax(sim, axis=S), sim = f0@f1.T * scale.
    Pass 1: sim tiles + online column max/sum.  Pass 2: per-row-tile normalize."""
    N, L, C = f0.shape
    S = f1.shape[1]
    tl, Lp = _pick_tile(L, 256)
    ts, Sp = _pick_tile(S, 512)
    f0p = (f0 if Lp == L else jnp.pad(f0, ((0, 0), (0, Lp - L), (0, 0)))).astype(jnp.bfloat16)
    f1p = (f1 if Sp == S else jnp.pad(f1, ((0, 0), (0, Sp - S), (0, 0)))).astype(jnp.bfloat16)

    sim, cs = pl.pallas_call(
        functools.partial(_sim_colstats_kernel, scale=float(scale), tl=tl, ts=ts,
                          l_valid=(L if Lp > L else None),
                          s_valid=(S if Sp > S else None)),
        grid=(N, Sp // ts, Lp // tl),
        in_specs=[pl.BlockSpec((1, tl, C), lambda n, j, i: (n, i, 0)),
                  pl.BlockSpec((1, ts, C), lambda n, j, i: (n, j, 0))],
        out_specs=[pl.BlockSpec((1, tl, ts), lambda n, j, i: (n, i, j)),
                   pl.BlockSpec((1, 2, ts), lambda n, j, i: (n, 0, j))],
        out_shape=[jax.ShapeDtypeStruct((N, Lp, Sp), jnp.float32),
                   jax.ShapeDtypeStruct((N, 2, Sp), jnp.float32)],
        compiler_params=_mosaic(("parallel", "parallel", "arbitrary")),
    )(f0p, f1p)

    conf = pl.pallas_call(
        _dual_softmax_kernel,
        grid=(N, Lp // tl),
        in_specs=[pl.BlockSpec((1, tl, Sp), lambda n, i: (n, i, 0)),
                  pl.BlockSpec((1, 2, Sp), lambda n, i: (n, 0, 0))],
        out_specs=pl.BlockSpec((1, tl, Sp), lambda n, i: (n, i, 0)),
        out_shape=jax.ShapeDtypeStruct((N, Lp, Sp), jnp.float32),
        compiler_params=_mosaic(("parallel", "parallel")),
    )(sim, cs)
    return conf[:, :L, :S]


# --- fine expectation: row-tiled dot against a 128-lane packed grid ----------------
def _fine_expectation_kernel(f0_ref, f1_ref, g_ref, o_ref, *, temp):
    f0 = f0_ref[...].astype(jnp.float32)                 # (tm, C)
    f1 = f1_ref[...].astype(jnp.float32)                 # (tm, WW, C)
    sim = jnp.sum(f0[:, None, :] * f1, axis=-1)          # (tm, WW)
    heat = jax.nn.softmax(temp * sim, axis=-1)
    o_ref[...] = jnp.dot(heat, g_ref[...], preferred_element_type=jnp.float32)


@functools.partial(jax.jit, static_argnames=('temp',))
def pallas_fine_expectation(f0_center, f1, grid_n, *, temp):
    M, WW, C = f1.shape
    tm, Mp = _pick_tile(M, 256)
    f0p = f0_center if Mp == M else jnp.pad(f0_center, ((0, Mp - M), (0, 0)))
    f1p = f1 if Mp == M else jnp.pad(f1, ((0, Mp - M), (0, 0), (0, 0)))
    # pack [gx, gy, gx^2, gy^2] + zeros into a (WW, 128) constant -> lane-dense store
    g4 = jnp.concatenate([grid_n, grid_n ** 2,
                          jnp.zeros((WW, 128 - 4), jnp.float32)], axis=1)
    out = pl.pallas_call(
        functools.partial(_fine_expectation_kernel, temp=float(temp)),
        grid=(Mp // tm,),
        in_specs=[pl.BlockSpec((tm, C), lambda i: (i, 0)),
                  pl.BlockSpec((tm, WW, C), lambda i: (i, 0, 0)),
                  pl.BlockSpec((WW, 128), lambda i: (0, 0))],
        out_specs=pl.BlockSpec((tm, 128), lambda i: (i, 0)),
        out_shape=jax.ShapeDtypeStruct((Mp, 128), jnp.float32),
        compiler_params=_mosaic(("parallel",)),
    )(f0p, f1p, g4)
    mom = out[:M, :4]
    coords = mom[:, :2]
    var = mom[:, 2:4] - coords ** 2
    std = jnp.sum(jnp.sqrt(jnp.maximum(var, 1e-10)), axis=-1, keepdims=True)
    return jnp.concatenate([coords, std], axis=-1)        # (M, 3)


# --------------------------------------------------------------------- JAX glue ops
# TODO(synk): im2col / unfold are plain-JAX gather glue; a direct sliding-window DMA
#             conv kernel would remove the kh*kw HBM amplification at real resolutions.
def im2col_nhwc(x, kh, kw, stride, pad):
    N, H, W, C = x.shape
    xp = jnp.pad(x, ((0, 0), (pad, pad), (pad, pad), (0, 0)))
    Ho = (H + 2 * pad - kh) // stride + 1
    Wo = (W + 2 * pad - kw) // stride + 1
    iy = (jnp.arange(Ho) * stride)[:, None] + jnp.arange(kh)[None, :]      # (Ho, kh)
    ix = (jnp.arange(Wo) * stride)[:, None] + jnp.arange(kw)[None, :]      # (Wo, kw)
    p = xp[:, iy[:, None, :, None], ix[None, :, None, :], :]               # (N,Ho,Wo,kh,kw,C)
    return p.reshape(N * Ho * Wo, kh * kw * C), Ho, Wo


@functools.partial(jax.jit, static_argnames=('stride', 'pad', 'scale', 'act', 'out_dtype'))
def conv2d(x, w, *, stride, pad, scale=None, act=None, out_dtype=jnp.bfloat16):
    """x: NHWC, w: (O, I, kh, kw).  im2col + Pallas matmul with fused BN-scale/act."""
    O, I, kh, kw = w.shape
    cols, Ho, Wo = im2col_nhwc(x, kh, kw, stride, pad)
    w2d = jnp.transpose(w, (2, 3, 1, 0)).reshape(kh * kw * I, O)
    y = pallas_matmul(cols, w2d, scale=scale, act=act, out_dtype=out_dtype)
    return y.reshape(x.shape[0], Ho, Wo, O)


@jax.jit
def upsample2x_bilinear_ac(x):
    # F.interpolate(scale_factor=2, mode='bilinear', align_corners=True), NHWC
    N, H, W, C = x.shape
    Ho, Wo = 2 * H, 2 * W
    ys = jnp.arange(Ho, dtype=jnp.float32) * (H - 1) / (Ho - 1)
    xs = jnp.arange(Wo, dtype=jnp.float32) * (W - 1) / (Wo - 1)
    y0 = jnp.floor(ys).astype(jnp.int32); y1 = jnp.minimum(y0 + 1, H - 1)
    x0 = jnp.floor(xs).astype(jnp.int32); x1 = jnp.minimum(x0 + 1, W - 1)
    wy = (ys - y0).reshape(Ho, 1, 1)
    wx = (xs - x0).reshape(1, Wo, 1)
    Ia = x[:, y0[:, None], x0[None, :], :]
    Ib = x[:, y0[:, None], x1[None, :], :]
    Ic = x[:, y1[:, None], x0[None, :], :]
    Id = x[:, y1[:, None], x1[None, :], :]
    out = Ia * (1 - wy) * (1 - wx) + Ib * (1 - wy) * wx \
        + Ic * wy * (1 - wx) + Id * wy * wx
    return out.astype(x.dtype)


@functools.partial(jax.jit, static_argnames=('W', 'stride', 'pad'))
def unfold_windows(x, *, W, stride, pad):
    """F.unfold(kernel=(W,W), stride, padding) rearranged to (N, L, W*W, C), NHWC in."""
    N, H, Wd, C = x.shape
    xp = jnp.pad(x, ((0, 0), (pad, pad), (pad, pad), (0, 0)))
    hc = (H + 2 * pad - W) // stride + 1
    wc = (Wd + 2 * pad - W) // stride + 1
    iy = (jnp.arange(hc) * stride)[:, None] + jnp.arange(W)[None, :]       # (hc, W)
    ix = (jnp.arange(wc) * stride)[:, None] + jnp.arange(W)[None, :]       # (wc, W)
    p = xp[:, iy[:, None, :, None], ix[None, :, None, :], :]               # (N,hc,wc,W,W,C)
    return p.reshape(N, hc * wc, W * W, C)


# --------------------------------------------------------------- parameter creation
_PARAM_KEY = jax.random.PRNGKey(0)
_PARAM_CTR = itertools.count()


def _init_conv(cout, cin, kh, kw):
    k = jax.random.fold_in(_PARAM_KEY, next(_PARAM_CTR))
    return jax.random.normal(k, (cout, cin, kh, kw), jnp.float32) / math.sqrt(cin * kh * kw)


def _init_linear(cin, cout):
    # stored as (in, out) so kernels never need a host-side transpose
    k = jax.random.fold_in(_PARAM_KEY, next(_PARAM_CTR))
    return jax.random.normal(k, (cin, cout), jnp.float32) / math.sqrt(float(cin))


def _init_block(cin, cout, stride):
    p = {'conv1': _init_conv(cout, cin, 3, 3),
         'conv2': _init_conv(cout, cout, 3, 3),
         'stride': stride}
    if stride != 1:
        p['ds'] = _init_conv(cout, cin, 1, 1)
    return p


def _init_encoder_layer(d):
    return {'qkv': _init_linear(d, 3 * d),          # fused q|k|v projection
            'merge': _init_linear(d, d),
            'mlp1_a': _init_linear(d, 2 * d),       # acts on x   (first half of cat)
            'mlp1_b': _init_linear(d, 2 * d),       # acts on msg (second half of cat)
            'mlp2': _init_linear(2 * d, d),
            'ln1_g': jnp.ones((1, d), jnp.float32), 'ln1_b': jnp.zeros((1, d), jnp.float32),
            'ln2_g': jnp.ones((1, d), jnp.float32), 'ln2_b': jnp.zeros((1, d), jnp.float32)}


def init_params(cfg):
    ini = cfg['resnetfpn']['initial_dim']
    d0, d1, d2 = cfg['resnetfpn']['block_dims']
    bb = {'conv1': _init_conv(ini, 1, 7, 7),
          'l1b1': _init_block(ini, d0, 1), 'l1b2': _init_block(d0, d0, 1),
          'l2b1': _init_block(d0, d1, 2), 'l2b2': _init_block(d1, d1, 1),
          'l3b1': _init_block(d1, d2, 2), 'l3b2': _init_block(d2, d2, 1),
          'l3_out': _init_conv(d2, d2, 1, 1),
          'l2_out': _init_conv(d2, d1, 1, 1),
          'l2_out2_a': _init_conv(d2, d2, 3, 3), 'l2_out2_b': _init_conv(d1, d2, 3, 3),
          'l1_out': _init_conv(d1, d0, 1, 1),
          'l1_out2_a': _init_conv(d1, d1, 3, 3), 'l1_out2_b': _init_conv(d0, d1, 3, 3)}
    coarse_layers = [_init_encoder_layer(cfg['coarse']['d_model'])
                     for _ in cfg['coarse']['layer_names']]
    fine_layers = [_init_encoder_layer(cfg['fine']['d_model'])
                   for _ in cfg['fine']['layer_names']]
    dmc, dmf = cfg['coarse']['d_model'], cfg['fine']['d_model']
    fp = {'down_proj_w': _init_linear(dmc, dmf),
          'down_proj_b': jnp.zeros((dmf,), jnp.float32),
          'merge_w_a': _init_linear(dmf, dmf),
          'merge_w_b': _init_linear(dmf, dmf),
          'merge_b': jnp.zeros((dmf,), jnp.float32)}
    return {'backbone': bb, 'loftr_coarse': coarse_layers,
            'loftr_fine': fine_layers, 'fine_preprocess': fp}


# ------------------------------------------------------------------------ modules
def basic_block(p, x):
    s = p['stride']
    y = conv2d(x, p['conv1'], stride=s, pad=1, scale=_BN_SCALE, act='relu')   # BN+ReLU fused
    y = conv2d(y, p['conv2'], stride=1, pad=1, scale=_BN_SCALE)               # BN fused
    if 'ds' in p:
        x = conv2d(x, p['ds'], stride=s, pad=0, scale=_BN_SCALE)              # BN fused
    return jax.nn.relu(x + y)


def resnet_fpn_8_2(p, x):
    x0 = conv2d(x, p['conv1'], stride=2, pad=3, scale=_BN_SCALE, act='relu')  # 1/2
    x1 = basic_block(p['l1b2'], basic_block(p['l1b1'], x0))                   # 1/2
    x2 = basic_block(p['l2b2'], basic_block(p['l2b1'], x1))                   # 1/4
    x3 = basic_block(p['l3b2'], basic_block(p['l3b1'], x2))                   # 1/8
    # FPN
    x3_out = conv2d(x3, p['l3_out'], stride=1, pad=0)
    x3_out_2x = upsample2x_bilinear_ac(x3_out)
    x2_out = conv2d(x2, p['l2_out'], stride=1, pad=0)
    t = x2_out + x3_out_2x
    t = conv2d(t, p['l2_out2_a'], stride=1, pad=1, scale=_BN_SCALE, act='leaky')
    x2_out = conv2d(t, p['l2_out2_b'], stride=1, pad=1)
    x2_out_2x = upsample2x_bilinear_ac(x2_out)
    x1_out = conv2d(x1, p['l1_out'], stride=1, pad=0)
    t = x1_out + x2_out_2x
    t = conv2d(t, p['l1_out2_a'], stride=1, pad=1, scale=_BN_SCALE, act='leaky')
    x1_out = conv2d(t, p['l1_out2_b'], stride=1, pad=1)
    return x3_out, x1_out        # coarse (1/8), fine (1/2), both NHWC bf16


def position_encoding_sine(d_model, h, w, temp_bug_fix):
    y_pos = jnp.cumsum(jnp.ones((h, w), jnp.float32), axis=0)
    x_pos = jnp.cumsum(jnp.ones((h, w), jnp.float32), axis=1)
    ar = jnp.arange(0, d_model // 2, 2, dtype=jnp.float32)
    if temp_bug_fix:
        div_term = jnp.exp(ar * (-math.log(10000.0) / (d_model // 2)))
    else:  # reproduce the original operator-precedence bug: (-log/d_model)//2
        div_term = jnp.exp(ar * (-math.log(10000.0) / d_model // 2))
    pe = jnp.zeros((h, w, d_model), jnp.float32)
    pe = pe.at[:, :, 0::4].set(jnp.sin(x_pos[:, :, None] * div_term))
    pe = pe.at[:, :, 1::4].set(jnp.cos(x_pos[:, :, None] * div_term))
    pe = pe.at[:, :, 2::4].set(jnp.sin(y_pos[:, :, None] * div_term))
    pe = pe.at[:, :, 3::4].set(jnp.cos(y_pos[:, :, None] * div_term))
    return pe[None]                                                        # (1,h,w,d)


@functools.partial(jax.jit, static_argnames=('nhead', 'is_self'))
def loftr_encoder_layer(p, x, source, *, nhead, is_self):
    d = x.shape[-1]
    if is_self:
        qkv = pallas_linear(x, p['qkv'], out_dtype=jnp.bfloat16)
        q, k, v = qkv[..., :d], qkv[..., d:2 * d], qkv[..., 2 * d:]
    else:
        q = pallas_linear(x, p['qkv'][:, :d], out_dtype=jnp.bfloat16)
        kv = pallas_linear(source, p['qkv'][:, d:], out_dtype=jnp.bfloat16)
        k, v = kv[..., :d], kv[..., d:]
    msg = pallas_linear_attention(q, k, v, nhead=nhead)                          # (B,L,d)
    msg = pallas_linear(msg, p['merge'], gamma=p['ln1_g'], beta=p['ln1_b'])      # merge+LN1
    h = pallas_linear2(x, p['mlp1_a'], msg, p['mlp1_b'],
                       act='relu', out_dtype=jnp.bfloat16)                       # mlp1+ReLU
    return pallas_linear(h, p['mlp2'], gamma=p['ln2_g'], beta=p['ln2_b'],
                         residual=x)                                             # mlp2+LN2+x


def local_feature_transformer(layer_params, layer_names, feat0, feat1, nhead):
    for p, name in zip(layer_params, layer_names):
        if name == 'self':
            feat0 = loftr_encoder_layer(p, feat0, feat0, nhead=nhead, is_self=True)
            feat1 = loftr_encoder_layer(p, feat1, feat1, nhead=nhead, is_self=True)
        else:  # cross (feat1 update uses the already-updated feat0, as in the reference)
            feat0 = loftr_encoder_layer(p, feat0, feat1, nhead=nhead, is_self=False)
            feat1 = loftr_encoder_layer(p, feat1, feat0, nhead=nhead, is_self=False)
    return feat0, feat1


def mask_border(m, b):
    if b <= 0:
        return m
    m = m.at[:, :b].set(False);  m = m.at[:, -b:].set(False)
    m = m.at[:, :, :b].set(False);  m = m.at[:, :, -b:].set(False)
    m = m.at[:, :, :, :b].set(False);  m = m.at[:, :, :, -b:].set(False)
    m = m.at[:, :, :, :, :b].set(False);  m = m.at[:, :, :, :, -b:].set(False)
    return m


def coarse_matching(feat_c0, feat_c1, data, mcfg):
    N, L, C = feat_c0.shape
    S = feat_c1.shape[1]
    # sim = (f0/sqrt(C)) @ (f1/sqrt(C)).T / temp == (f0 @ f1.T) * 1/(C*temp), fused in-kernel
    scale_sim = 1.0 / (C * mcfg['dsmax_temperature'])
    conf = pallas_sim_dual_softmax(feat_c0, feat_c1, scale=scale_sim)       # (N, L, S)
    data['conf_matrix'] = conf

    h0c, w0c = data['hw0_c']; h1c, w1c = data['hw1_c']
    mask = conf > mcfg['thr']
    mask = mask_border(mask.reshape(N, h0c, w0c, h1c, w1c), mcfg['border_rm'])
    mask = mask.reshape(N, L, S)
    mask = mask & (conf == conf.max(axis=2, keepdims=True)) \
                & (conf == conf.max(axis=1, keepdims=True))                 # mutual nearest
    mask_v = jnp.any(mask, axis=2)
    all_j = jnp.argmax(mask, axis=2)
    b_ids, i_ids = jnp.nonzero(mask_v)                                      # data-dependent
    j_ids = all_j[b_ids, i_ids]
    mconf = conf[b_ids, i_ids, j_ids]

    scale = data['hw0_i'][0] / data['hw0_c'][0]
    mkpts0_c = jnp.stack([i_ids % w0c, i_ids // w0c], axis=1).astype(jnp.float32) * scale
    mkpts1_c = jnp.stack([j_ids % w1c, j_ids // w1c], axis=1).astype(jnp.float32) * scale
    keep = mconf != 0
    data.update({'b_ids': b_ids, 'i_ids': i_ids, 'j_ids': j_ids,
                 'gt_mask': mconf == 0, 'm_bids': b_ids[keep],
                 'mkpts0_c': mkpts0_c[keep], 'mkpts1_c': mkpts1_c[keep],
                 'mconf': mconf[keep]})


def fine_preprocess(p, feat_f0, feat_f1, feat_c0, feat_c1, data, cfg):
    W = cfg['fine_window_size']
    stride = data['hw0_f'][0] // data['hw0_c'][0]
    data['W'] = W
    d_f = cfg['fine']['d_model']
    if data['b_ids'].shape[0] == 0:
        z = jnp.zeros((0, W * W, d_f), jnp.float32)
        return z, z
    f0u = unfold_windows(feat_f0, W=W, stride=stride, pad=W // 2)[data['b_ids'], data['i_ids']]
    f1u = unfold_windows(feat_f1, W=W, stride=stride, pad=W // 2)[data['b_ids'], data['j_ids']]
    if cfg['fine_concat_coarse_feat']:
        c_cat = jnp.concatenate([feat_c0[data['b_ids'], data['i_ids']],
                                 feat_c1[data['b_ids'], data['j_ids']]], axis=0)
        c_win = pallas_linear(c_cat, p['down_proj_w'], bias=p['down_proj_b'])    # (2M, Cf)
        f_cat = jnp.concatenate([f0u, f1u], axis=0)                              # (2M, WW, Cf)
        # TODO(synk): broadcast of the coarse window feature is still a host-side copy;
        #             could be folded into the kernel as a per-row residual term.
        c_rep = jnp.broadcast_to(c_win[:, None, :], f_cat.shape).astype(jnp.float32)
        merged = pallas_linear2(f_cat, p['merge_w_a'], c_rep, p['merge_w_b'],
                                bias=p['merge_b'])
        M = f0u.shape[0]
        f0u, f1u = merged[:M], merged[M:]
    else:
        f0u = f0u.astype(jnp.float32)
        f1u = f1u.astype(jnp.float32)
    return f0u, f1u


def fine_matching(feat_f0, feat_f1, data):
    M, WW, C = feat_f0.shape
    W = int(round(WW ** 0.5))
    scale = data['hw0_i'][0] / data['hw0_f'][0]
    if M == 0:
        data['expec_f'] = jnp.zeros((0, 3), jnp.float32)
        data['mkpts0_f'] = data['mkpts0_c']
        data['mkpts1_f'] = data['mkpts1_c']
        return
    f0_center = feat_f0[:, WW // 2, :]
    softmax_temp = 1.0 / C ** 0.5
    xs = jnp.linspace(-1.0, 1.0, W, dtype=jnp.float32)
    gy, gx = jnp.meshgrid(xs, xs, indexing='ij')
    grid_n = jnp.stack([gx, gy], axis=-1).reshape(WW, 2)              # normalized (x, y)
    expec = pallas_fine_expectation(f0_center, feat_f1, grid_n, temp=float(softmax_temp))
    coords = expec[:, :2]
    data['expec_f'] = expec
    data['mkpts0_f'] = data['mkpts0_c']
    nconf = data['mconf'].shape[0]
    data['mkpts1_f'] = data['mkpts1_c'] + (coords * (W // 2) * scale)[:nconf]


# -------------------------------------------------------------------- LoFTR forward
def loftr_forward(params, data, cfg):
    bs = data['image0'].shape[0]
    hw0_i = tuple(data['image0'].shape[2:])
    hw1_i = tuple(data['image1'].shape[2:])
    _data = {'bs': bs, 'hw0_i': hw0_i, 'hw1_i': hw1_i}

    img0 = jnp.transpose(data['image0'], (0, 2, 3, 1))      # NHWC internally
    img1 = jnp.transpose(data['image1'], (0, 2, 3, 1))

    if hw0_i == hw1_i:
        feats_c, feats_f = resnet_fpn_8_2(params['backbone'],
                                          jnp.concatenate([img0, img1], 0))
        feat_c0, feat_c1 = feats_c[:bs], feats_c[bs:]
        feat_f0, feat_f1 = feats_f[:bs], feats_f[bs:]
    else:
        feat_c0, feat_f0 = resnet_fpn_8_2(params['backbone'], img0)
        feat_c1, feat_f1 = resnet_fpn_8_2(params['backbone'], img1)

    _data.update({'hw0_c': tuple(feat_c0.shape[1:3]), 'hw1_c': tuple(feat_c1.shape[1:3]),
                  'hw0_f': tuple(feat_f0.shape[1:3]), 'hw1_f': tuple(feat_f1.shape[1:3])})

    dmc = cfg['coarse']['d_model']
    tbf = cfg['coarse']['temp_bug_fix']
    pe0 = position_encoding_sine(dmc, feat_c0.shape[1], feat_c0.shape[2], tbf)
    fc0 = (feat_c0.astype(jnp.float32) + pe0).reshape(feat_c0.shape[0], -1, dmc)
    pe1 = position_encoding_sine(dmc, feat_c1.shape[1], feat_c1.shape[2], tbf)
    fc1 = (feat_c1.astype(jnp.float32) + pe1).reshape(feat_c1.shape[0], -1, dmc)

    # TODO(synk): optional mask0/mask1 path (resize + masked attention) not implemented.
    fc0, fc1 = local_feature_transformer(params['loftr_coarse'],
                                         cfg['coarse']['layer_names'],
                                         fc0, fc1, cfg['coarse']['nhead'])

    coarse_matching(fc0, fc1, _data, cfg['match_coarse'])

    f0u, f1u = fine_preprocess(params['fine_preprocess'], feat_f0, feat_f1,
                               fc0, fc1, _data, cfg)
    if f0u.shape[0] != 0:
        f0u, f1u = local_feature_transformer(params['loftr_fine'],
                                             cfg['fine']['layer_names'],
                                             f0u, f1u, cfg['fine']['nhead'])
    fine_matching(f0u, f1u, _data)

    return {'keypoints0': _data['mkpts0_f'],
            'keypoints1': _data['mkpts1_f'],
            'confidence': _data['mconf'],
            'batch_indexes': _data['b_ids']}


# ------------------------------------------------------------------------------ main
if __name__ == "__main__":
    key = jax.random.PRNGKey(0)
    k0, k1 = jax.random.split(key)
    img0 = jax.random.uniform(k0, (1, 1, 64, 64), jnp.float32)
    img1 = jax.random.uniform(k1, (1, 1, 64, 64), jnp.float32)

    params = init_params(CFG)
    out = loftr_forward(params, {'image0': img0, 'image1': img1}, CFG)

    for v in out.values():
        jax.block_until_ready(v)
    assert out['keypoints0'].shape[1] == 2 and out['keypoints1'].shape[1] == 2
    assert out['confidence'].shape[0] == out['keypoints0'].shape[0]
    print("KERNEL_OK")
</pallas_src>

<mosaic_0001>
module attributes {stable_mosaic.version = 11 : i64} {
  func.func @_matmul_k1_kernel(%arg0: i32, %arg1: i32, %arg2: memref<512x64xbf16, #tpu.memory_space<vmem>>, %arg3: memref<64x128xbf16, #tpu.memory_space<vmem>>, %arg4: memref<512x128xbf16, #tpu.memory_space<vmem>>) attributes {dimension_semantics = [#tpu.dimension_semantics<parallel>, #tpu.dimension_semantics<parallel>], iteration_bounds = array<i64: 4, 1>, scalar_prefetch = 0 : i64, scratch_operands = 0 : i64, tpu.core_type = #tpu.core_type<tc>, window_params = [{transform_indices = @transform_0, window_bounds = array<i64: 512, 64>}, {transform_indices = @transform_1, window_bounds = array<i64: 64, 128>}, {transform_indices = @transform_2, window_bounds = array<i64: 512, 128>}]} {
    %c0 = arith.constant 0 : index
    %c0_0 = arith.constant 0 : index
    %0 = vector.load %arg2[%c0, %c0_0] : memref<512x64xbf16, #tpu.memory_space<vmem>>, vector<512x64xbf16>
    %c0_1 = arith.constant 0 : index
    %c0_2 = arith.constant 0 : index
    %1 = vector.load %arg3[%c0_1, %c0_2] : memref<64x128xbf16, #tpu.memory_space<vmem>>, vector<64x128xbf16>
    %cst = arith.constant dense<0.000000e+00> : vector<512x128xf32>
    %2 = tpu.matmul %0, %1, %cst {dimension_numbers = #tpu.dot_dimension_numbers<[1], [0], [0], [1], [0, 0, 1, 1], [], []>} : vector<512x64xbf16>, vector<64x128xbf16>, vector<512x128xf32> -> vector<512x128xf32>
    %cst_3 = arith.constant 0.999994993 : f32
    %3 = vector.broadcast %cst_3 : f32 to vector<512x128xf32>
    %4 = arith.mulf %2, %3 : vector<512x128xf32>
    %cst_4 = arith.constant 0.000000e+00 : f32
    %5 = vector.broadcast %cst_4 : f32 to vector<512x128xf32>
    %6 = arith.maximumf %4, %5 : vector<512x128xf32>
    %7 = arith.truncf %6 : vector<512x128xf32> to vector<512x128xbf16>
    %c0_5 = arith.constant 0 : index
    %c0_6 = arith.constant 0 : index
    %8 = vector.load %arg4[%c0_5, %c0_6] : memref<512x128xbf16, #tpu.memory_space<vmem>>, vector<512x128xbf16>
    tpu.vector_store %arg4[%c0_5, %c0_6], %7 {strides = array<i32>} : memref<512x128xbf16, #tpu.memory_space<vmem>>, vector<512x128xbf16>,
    return
  }
  func.func @transform_0(%arg0: i32, %arg1: i32) -> (i32, i32) {
    %c0_i32 = arith.constant 0 : i32
    %c0_i32_0 = arith.constant 0 : i32
    return %arg0, %c0_i32 : i32, i32
  }
  func.func @transform_1(%arg0: i32, %arg1: i32) -> (i32, i32) {
    %c0_i32 = arith.constant 0 : i32
    %c0_i32_0 = arith.constant 0 : i32
    return %c0_i32, %arg1 : i32, i32
  }
  func.func @transform_2(%arg0: i32, %arg1: i32) -> (i32, i32) {
    %c0_i32 = arith.constant 0 : i32
    return %arg0, %arg1 : i32, i32
  }
}

</mosaic_0001>

<bundles_post_ra>
// kernel: pallas_matmul.1
= control target key start
LH: loop header
LB: loop body
LE: loop exit
PB: predicated region body
PF: predicated region fallthrough
CT: control target
= control target key end

     0   :  { %s1979_s9 = smov 0   ;;  %s1981_s10 = smov 0   ;;  %s2131_s0 = inlined_call_operand.vmem [shape: bf16[2048,64], index: 0, kind: input, shape index: {}]   ;;  %s2132_s1 = inlined_call_operand.vmem [shape: bf16[64,128], index: 1, kind: input, shape index: {}]   ;;  %s2133_s2 = inlined_call_operand.vmem [shape: bf16[2048,128], index: 2, kind: output, shape index: {}]  }
   0x1   :  { %s1983_s11 = smov 0  }
   0x2 LB: > { %s24_s12 = sadd.s32 1, %s1958_s10  ;;  %p1370_p0 = scmp.ge.s32.totalorder %s1962_s11, 1  ;;  %s1962_s11 = sphi %s1983_s11, %s12_s11   ;;  %s1958_s10 = sphi %s1981_s10, %s2135_s10   ;;  %s1954_s9 = sphi %s1979_s9, %s2134_s9  }
   0x3   : > { %p26_p1 = scmp.ge.s32.totalorder %s24_s12, 4  ;;  %p136_p2 = scmp.lt.s32.totalorder %s1962_s11, 5 }
   0x5   : > { %s2137_s12 = smov (%p26_p1, %s24_s12), 0  ;;  %p137_p3 = pnand %p1370_p0, %p136_p2 }
   0x6   : > { %s1371_s15 = sshll.u32 (!%p137_p3), %s1954_s9, 6 }
   0x7   : > { %140 = sbr.rel (%p137_p3) target bundleno = 291 (0x123), region = 28  ;;  %p166_p4 = scmp.lt.s32.totalorder (!%p137_p3), %s1371_s15, 255 }
   0xc   : > { %v1904_v0 = vld [vmem:[%s2132_s1 + $0x18] sm:$0xff]   ;;  %v1905_v1 = vld [vmem:[%s2132_s1 + $0x10] sm:$0xff]   ;;  %s2139_s15 = smov (!%p166_p4, %s1371_s15), 255  ;;  %v1906_v2 = vld [vmem:[%s2132_s1 + $0x8] sm:$0xff]   ;;  %vm441_vm0 = vcmask 523264  }
   0xd   : > { %1800 = vmatprep.subr.bf16.mxu0 %v1904_v0  ;;  %1872 = vmatprep.subr.bf16.mxu1 %v1904_v0  ;;  %s1372_s20 = sshll.u32 %s2139_s15, 2  ;;  %v1907_v3 = vld [vmem:[%s2132_s1] sm:$0xff]  }
   0xe   : > { %1801 = vmatpush3.bf16.msra.mxu0 %v1904_v0  ;;  %1876 = vmatpush3.bf16.msra.mxu1 %v1904_v0  ;;  %s2017_s25 = scalar_lea.vmem %s2131_s0, %s1372_s20  ;;  %s2088_s28 = scalar_lea.vmem %s2133_s2, %s1372_s20 }
   0xf   : > { %1802 = vmatprep.subr.bf16.mxu0 %v1905_v1  ;;  %1873 = vmatprep.subr.bf16.mxu1 %v1905_v1  ;;  %v1908_v4 = vld [vmem:[%s2017_s25] sm:$0xff]   ;;  %v1910_v6 = vld [vmem:[%s2017_s25 + $0x8] sm:$0xff]   ;;  %v1912_v8 = vld [vmem:[%s2017_s25 + $0x10] sm:$0xff]  }
  0x10   : > { %v1909_v5 = vld [vmem:[%s2017_s25 + $0x80] sm:$0xff]   ;;  %1808 = vmatprep.mubr.msk.bf16.mxu0 %vm441_vm0, %v1908_v4  ;;  %v1911_v7 = vld [vmem:[%s2017_s25 + $0x88] sm:$0xff]   ;;  %v1913_v9 = vld [vmem:[%s2017_s25 + $0x90] sm:$0xff]  }
  0x11   : > { %1840 = vmatprep.mubr.msk.bf16.mxu1 %vm441_vm0, %v1909_v5  ;;  %v1914_v10 = vld [vmem:[%s2017_s25 + $0x18] sm:$0xff]   ;;  %v1916_v12 = vld [vmem:[%s2017_s25 + $0x20] sm:$0xff]   ;;  %v1918_v14 = vld [vmem:[%s2017_s25 + $0x28] sm:$0xff]  }
  0x12   : > { %1803 = vmatpush3.bf16.msra.mxu0 %v1905_v1  ;;  %1877 = vmatpush3.bf16.msra.mxu1 %v1905_v1  ;;  %v1915_v11 = vld [vmem:[%s2017_s25 + $0x98] sm:$0xff]   ;;  %v1917_v13 = vld [vmem:[%s2017_s25 + $0xa0] sm:$0xff]   ;;  %v1919_v15 = vld [vmem:[%s2017_s25 + $0xa8] sm:$0xff]  }
  0x13   : > { %1804 = vmatprep.subr.bf16.mxu0 %v1906_v2  ;;  %1874 = vmatprep.subr.bf16.mxu1 %v1906_v2  ;;  %v1920_v16 = vld [vmem:[%s2017_s25 + $0x30] sm:$0xff]   ;;  %v1922_v18 = vld [vmem:[%s2017_s25 + $0x38] sm:$0xff]   ;;  %v1924_v20 = vld [vmem:[%s2017_s25 + $0x40] sm:$0xff]  }
  0x14   : > { %v1921_v17 = vld [vmem:[%s2017_s25 + $0xb0] sm:$0xff]   ;;  %v1923_v19 = vld [vmem:[%s2017_s25 + $0xb8] sm:$0xff]   ;;  %v1925_v21 = vld [vmem:[%s2017_s25 + $0xc0] sm:$0xff]  }
  0x15   : > { %v1926_v22 = vld [vmem:[%s2017_s25 + $0x48] sm:$0xff]   ;;  %v1928_v24 = vld [vmem:[%s2017_s25 + $0x50] sm:$0xff]   ;;  %v1930_v26 = vld [vmem:[%s2017_s25 + $0x58] sm:$0xff]  }
  0x16   : > { %1805 = vmatpush3.bf16.msra.mxu0 %v1906_v2  ;;  %1878 = vmatpush3.bf16.msra.mxu1 %v1906_v2  ;;  %v1927_v23 = vld [vmem:[%s2017_s25 + $0xc8] sm:$0xff]   ;;  %v1929_v25 = vld [vmem:[%s2017_s25 + $0xd0] sm:$0xff]   ;;  %v1931_v27 = vld [vmem:[%s2017_s25 + $0xd8] sm:$0xff]  }
  0x17   : > { %1806 = vmatprep.subr.bf16.mxu0 %v1907_v3  ;;  %1875 = vmatprep.subr.bf16.mxu1 %v1907_v3  ;;  %v1932_v28 = vld [vmem:[%s2017_s25 + $0x60] sm:$0xff]   ;;  %v1934_v30 = vld [vmem:[%s2017_s25 + $0x68] sm:$0xff]   ;;  %v1936_v32 = vld [vmem:[%s2017_s25 + $0x70] sm:$0xff]  }
  0x18   : > { %v1933_v29 = vld [vmem:[%s2017_s25 + $0xe0] sm:$0xff]   ;;  %v1935_v31 = vld [vmem:[%s2017_s25 + $0xe8] sm:$0xff]   ;;  %v1937_v33 = vld [vmem:[%s2017_s25 + $0xf0] sm:$0xff]  }
  0x19   : > { %v1938_v34 = vld [vmem:[%s2017_s25 + $0x78] sm:$0xff]  }
  0x1a   : > { %1807 = vmatpush3.bf16.msra.mxu0 %v1907_v3  ;;  %1879 = vmatpush3.bf16.msra.mxu1 %v1907_v3  ;;  %v1939_v35 = vld [vmem:[%s2017_s25 + $0xf8] sm:$0xff]  }
  0x1d   : > { %1809 = vmatmul.mubr.msk.bf16.vlgmr.msra.gmra.mxu0 %vm441_vm0, %v1910_v6  ;;  %1841 = vmatmul.mubr.msk.bf16.vlgmr.msra.gmra.mxu1 %vm441_vm0, %v1911_v7 }
  0x1e   : > { %1812 = vmatprep.mubr.msk.bf16.mxu0 %vm441_vm0, %v1912_v8  ;;  %1844 = vmatprep.mubr.msk.bf16.mxu1 %vm441_vm0, %v1913_v9 }
  0x25   : > { %1813 = vmatmul.mubr.msk.bf16.gmra.mxu0 %vm441_vm0, %v1914_v10  ;;  %1845 = vmatmul.mubr.msk.bf16.gmra.mxu1 %vm441_vm0, %v1915_v11 }
  0x26   : > { %1816 = vmatprep.mubr.msk.bf16.mxu0 %vm441_vm0, %v1916_v12  ;;  %1848 = vmatprep.mubr.msk.bf16.mxu1 %vm441_vm0, %v1917_v13 }
  0x2d   : > { %1817 = vmatmul.mubr.msk.bf16.gmra.mxu0 %vm441_vm0, %v1918_v14  ;;  %1849 = vmatmul.mubr.msk.bf16.gmra.mxu1 %vm441_vm0, %v1919_v15 }
  0x2e   : > { %1820 = vmatprep.mubr.msk.bf16.mxu0 %vm441_vm0, %v1920_v16  ;;  %1852 = vmatprep.mubr.msk.bf16.mxu1 %vm441_vm0, %v1921_v17 }
  0x35   : > { %1821 = vmatmul.mubr.msk.bf16.gmra.mxu0 %vm441_vm0, %v1922_v18  ;;  %1853 = vmatmul.mubr.msk.bf16.gmra.mxu1 %vm441_vm0, %v1923_v19 }
  0x36   : > { %1824 = vmatprep.mubr.msk.bf16.mxu0 %vm441_vm0, %v1924_v20  ;;  %1856 = vmatprep.mubr.msk.bf16.mxu1 %vm441_vm0, %v1925_v21 }
  0x3d   : > { %1825 = vmatmul.mubr.msk.bf16.gmra.mxu0 %vm441_vm0, %v1926_v22  ;;  %1857 = vmatmul.mubr.msk.bf16.gmra.mxu1 %vm441_vm0, %v1927_v23 }
  0x3e   : > { %1828 = vmatprep.mubr.msk.bf16.mxu0 %vm441_vm0, %v1928_v24  ;;  %1860 = vmatprep.mubr.msk.bf16.mxu1 %vm441_vm0, %v1929_v25 }
  0x45   : > { %1829 = vmatmul.mubr.msk.bf16.gmra.mxu0 %vm441_vm0, %v1930_v26  ;;  %1861 = vmatmul.mubr.msk.bf16.gmra.mxu1 %vm441_vm0, %v1931_v27 }
  0x46   : > { %1832 = vmatprep.mubr.msk.bf16.mxu0 %vm441_vm0, %v1932_v28  ;;  %1864 = vmatprep.mubr.msk.bf16.mxu1 %vm441_vm0, %v1933_v29 }
  0x4d   : > { %1833 = vmatmul.mubr.msk.bf16.gmra.mxu0 %vm441_vm0, %v1934_v30  ;;  %1865 = vmatmul.mubr.msk.bf16.gmra.mxu1 %vm441_vm0, %v1935_v31 }
  0x4e   : > { %1836 = vmatprep.mubr.msk.bf16.mxu0 %vm441_vm0, %v1936_v32  ;;  %1868 = vmatprep.mubr.msk.bf16.mxu1 %vm441_vm0, %v1937_v33 }
  0x55   : > { %1837 = vmatmul.mubr.msk.bf16.gmra.mxu0 %vm441_vm0, %v1938_v34  ;;  %1869 = vmatmul.mubr.msk.bf16.gmra.mxu1 %vm441_vm0, %v1939_v35 }
  0xdd   : > { %v1810_v36 = vpop.f32.mrf.mxu0  ;;  %v1842_v37 = vpop.f32.mrf.mxu1 }
  0xde   : > { %v829_v38 = vmul.f32 0.999995, %v1810_v36  ;;  %v861_v39 = vmul.f32 0.999995, %v1842_v37 }
  0xdf   : > { %v572_v40 = vpop.f32.mrf.mxu0  ;;  %v700_v41 = vpop.f32.mrf.mxu1 }
  0xe0   : > { %v827_v42 = vmul.f32 0.999995, %v572_v40  ;;  %v859_v43 = vmul.f32 0.999995, %v700_v41  ;;  %v893_v48 = vmax.f32 %v829_v38, 0.0  ;;  %v925_v49 = vmax.f32 %v861_v39, 0.0 }
  0xe1   : > { %v1811_v44 = vpop.f32.mrf.mxu0  ;;  %v1843_v45 = vpop.f32.mrf.mxu1 }
  0xe2   : > { %v830_v46 = vmul.f32 0.999995, %v1811_v44  ;;  %v862_v47 = vmul.f32 0.999995, %v1843_v45  ;;  %v891_v56 = vmax.f32 %v827_v42, 0.0  ;;  %v923_v57 = vmax.f32 %v859_v43, 0.0 }
  0xe3   : > { %v575_v50 = vpop.f32.mrf.mxu0  ;;  %v703_v51 = vpop.f32.mrf.mxu1 }
  0xe4   : > { %v894_v52 = vmax.f32 %v830_v46, 0.0  ;;  %v926_v53 = vmax.f32 %v862_v47, 0.0  ;;  %v828_v54 = vmul.f32 0.999995, %v575_v50  ;;  %v860_v55 = vmul.f32 0.999995, %v703_v51 }
  0xe5   : > { %v1814_v58 = vpop.f32.mrf.mxu0  ;;  %v1846_v59 = vpop.f32.mrf.mxu1 }
  0xe6   : > { %v1581_v60 = vpack.c.bf16 %v894_v52, %v893_v48  ;;  %v1661_v61 = vpack.c.bf16 %v926_v53, %v925_v49  ;;  %v892_v62 = vmax.f32 %v828_v54, 0.0  ;;  %v924_v63 = vmax.f32 %v860_v55, 0.0 }
  0xe7   : > { %v833_v0 = vmul.f32 0.999995, %v1814_v58  ;;  %v865_v1 = vmul.f32 0.999995, %v1846_v59  ;;  %v588_v2 = vpop.f32.mrf.mxu0  ;;  %v716_v3 = vpop.f32.mrf.mxu1 }
  0xe8   : > { %1733 = vst [vmem:[%s2088_s28 + $0x8] sm:$0xff] %v1581_v60   ;;  %1749 = vst [vmem:[%s2088_s28 + $0x88] sm:$0xff] %v1661_v61   ;;  %v1576_v4 = vpack.c.bf16 %v892_v62, %v891_v56  ;;  %v1656_v5 = vpack.c.bf16 %v924_v63, %v923_v57  ;;  %v831_v6 = vmul.f32 0.999995, %v588_v2  ;;  %v863_v7 = vmul.f32 0.999995, %v716_v3 }
  0xe9   : > { %v1815_v8 = vpop.f32.mrf.mxu0  ;;  %v1847_v9 = vpop.f32.mrf.mxu1  ;;  %v897_v12 = vmax.f32 %v833_v0, 0.0  ;;  %v929_v13 = vmax.f32 %v865_v1, 0.0 }
  0xea   : > { %1577 = vst [vmem:[%s2088_s28] sm:$0xff] %v1576_v4   ;;  %1748 = vst [vmem:[%s2088_s28 + $0x80] sm:$0xff] %v1656_v5   ;;  %v834_v10 = vmul.f32 0.999995, %v1815_v8  ;;  %v866_v11 = vmul.f32 0.999995, %v1847_v9  ;;  %v895_v20 = vmax.f32 %v831_v6, 0.0 }
  0xeb   : > { %v591_v14 = vpop.f32.mrf.mxu0  ;;  %v719_v15 = vpop.f32.mrf.mxu1  ;;  %v927_v21 = vmax.f32 %v863_v7, 0.0 }
  0xec   : > { %v898_v16 = vmax.f32 %v834_v10, 0.0  ;;  %v930_v17 = vmax.f32 %v866_v11, 0.0  ;;  %v832_v18 = vmul.f32 0.999995, %v591_v14  ;;  %v864_v19 = vmul.f32 0.999995, %v719_v15 }
  0xed   : > { %v1818_v22 = vpop.f32.mrf.mxu0  ;;  %v1850_v23 = vpop.f32.mrf.mxu1 }
  0xee   : > { %v1591_v24 = vpack.c.bf16 %v898_v16, %v897_v12  ;;  %v1671_v25 = vpack.c.bf16 %v930_v17, %v929_v13  ;;  %v896_v26 = vmax.f32 %v832_v18, 0.0  ;;  %v928_v27 = vmax.f32 %v864_v19, 0.0 }
  0xef   : > { %v837_v28 = vmul.f32 0.999995, %v1818_v22  ;;  %v869_v29 = vmul.f32 0.999995, %v1850_v23  ;;  %v604_v30 = vpop.f32.mrf.mxu0  ;;  %v732_v31 = vpop.f32.mrf.mxu1 }
  0xf0   : > { %1735 = vst [vmem:[%s2088_s28 + $0x18] sm:$0xff] %v1591_v24   ;;  %1751 = vst [vmem:[%s2088_s28 + $0x98] sm:$0xff] %v1671_v25   ;;  %v1586_v32 = vpack.c.bf16 %v896_v26, %v895_v20  ;;  %v1666_v33 = vpack.c.bf16 %v928_v27, %v927_v21  ;;  %v835_v34 = vmul.f32 0.999995, %v604_v30  ;;  %v867_v35 = vmul.f32 0.999995, %v732_v31 }
  0xf1   : > { %v1819_v36 = vpop.f32.mrf.mxu0  ;;  %v1851_v37 = vpop.f32.mrf.mxu1  ;;  %v901_v40 = vmax.f32 %v837_v28, 0.0  ;;  %v933_v41 = vmax.f32 %v869_v29, 0.0 }
  0xf2   : > { %1734 = vst [vmem:[%s2088_s28 + $0x10] sm:$0xff] %v1586_v32   ;;  %1750 = vst [vmem:[%s2088_s28 + $0x90] sm:$0xff] %v1666_v33   ;;  %v838_v38 = vmul.f32 0.999995, %v1819_v36  ;;  %v870_v39 = vmul.f32 0.999995, %v1851_v37 }
  0xf3   : > { %v607_v42 = vpop.f32.mrf.mxu0  ;;  %v735_v43 = vpop.f32.mrf.mxu1  ;;  %v899_v48 = vmax.f32 %v835_v34, 0.0  ;;  %v931_v49 = vmax.f32 %v867_v35, 0.0 }
  0xf4   : > { %v902_v44 = vmax.f32 %v838_v38, 0.0  ;;  %v934_v45 = vmax.f32 %v870_v39, 0.0  ;;  %v836_v46 = vmul.f32 0.999995, %v607_v42  ;;  %v868_v47 = vmul.f32 0.999995, %v735_v43 }
  0xf5   : > { %v1822_v50 = vpop.f32.mrf.mxu0  ;;  %v1854_v51 = vpop.f32.mrf.mxu1 }
  0xf6   : > { %v1601_v52 = vpack.c.bf16 %v902_v44, %v901_v40  ;;  %v1681_v53 = vpack.c.bf16 %v934_v45, %v933_v41  ;;  %v900_v54 = vmax.f32 %v836_v46, 0.0  ;;  %v932_v55 = vmax.f32 %v868_v47, 0.0 }
  0xf7   : > { %v841_v56 = vmul.f32 0.999995, %v1822_v50  ;;  %v873_v57 = vmul.f32 0.999995, %v1854_v51  ;;  %v620_v58 = vpop.f32.mrf.mxu0  ;;  %v748_v59 = vpop.f32.mrf.mxu1 }
  0xf8   : > { %1737 = vst [vmem:[%s2088_s28 + $0x28] sm:$0xff] %v1601_v52   ;;  %1753 = vst [vmem:[%s2088_s28 + $0xa8] sm:$0xff] %v1681_v53   ;;  %v1596_v60 = vpack.c.bf16 %v900_v54, %v899_v48  ;;  %v1676_v61 = vpack.c.bf16 %v932_v55, %v931_v49  ;;  %v839_v62 = vmul.f32 0.999995, %v620_v58  ;;  %v871_v63 = vmul.f32 0.999995, %v748_v59 }
  0xf9   : > { %v1823_v0 = vpop.f32.mrf.mxu0  ;;  %v1855_v1 = vpop.f32.mrf.mxu1  ;;  %v905_v4 = vmax.f32 %v841_v56, 0.0  ;;  %v937_v5 = vmax.f32 %v873_v57, 0.0 }
  0xfa   : > { %1736 = vst [vmem:[%s2088_s28 + $0x20] sm:$0xff] %v1596_v60   ;;  %1752 = vst [vmem:[%s2088_s28 + $0xa0] sm:$0xff] %v1676_v61   ;;  %v842_v2 = vmul.f32 0.999995, %v1823_v0  ;;  %v874_v3 = vmul.f32 0.999995, %v1855_v1 }
  0xfb   : > { %v623_v6 = vpop.f32.mrf.mxu0  ;;  %v751_v7 = vpop.f32.mrf.mxu1  ;;  %v903_v12 = vmax.f32 %v839_v62, 0.0  ;;  %v935_v13 = vmax.f32 %v871_v63, 0.0 }
  0xfc   : > { %v906_v8 = vmax.f32 %v842_v2, 0.0  ;;  %v938_v9 = vmax.f32 %v874_v3, 0.0  ;;  %v840_v10 = vmul.f32 0.999995, %v623_v6  ;;  %v872_v11 = vmul.f32 0.999995, %v751_v7 }
  0xfd   : > { %v1826_v14 = vpop.f32.mrf.mxu0  ;;  %v1858_v15 = vpop.f32.mrf.mxu1 }
  0xfe   : > { %v1611_v16 = vpack.c.bf16 %v906_v8, %v905_v4  ;;  %v1691_v17 = vpack.c.bf16 %v938_v9, %v937_v5  ;;  %v904_v18 = vmax.f32 %v840_v10, 0.0  ;;  %v936_v19 = vmax.f32 %v872_v11, 0.0 }
  0xff   : > { %v845_v20 = vmul.f32 0.999995, %v1826_v14  ;;  %v877_v21 = vmul.f32 0.999995, %v1858_v15  ;;  %v636_v22 = vpop.f32.mrf.mxu0  ;;  %v764_v23 = vpop.f32.mrf.mxu1 }
 0x100   : > { %1739 = vst [vmem:[%s2088_s28 + $0x38] sm:$0xff] %v1611_v16   ;;  %1755 = vst [vmem:[%s2088_s28 + $0xb8] sm:$0xff] %v1691_v17   ;;  %v1606_v24 = vpack.c.bf16 %v904_v18, %v903_v12  ;;  %v1686_v25 = vpack.c.bf16 %v936_v19, %v935_v13  ;;  %v843_v26 = vmul.f32 0.999995, %v636_v22  ;;  %v875_v27 = vmul.f32 0.999995, %v764_v23 }
 0x101   : > { %v1827_v28 = vpop.f32.mrf.mxu0  ;;  %v1859_v29 = vpop.f32.mrf.mxu1  ;;  %v909_v32 = vmax.f32 %v845_v20, 0.0  ;;  %v941_v33 = vmax.f32 %v877_v21, 0.0 }
 0x102   : > { %1738 = vst [vmem:[%s2088_s28 + $0x30] sm:$0xff] %v1606_v24   ;;  %1754 = vst [vmem:[%s2088_s28 + $0xb0] sm:$0xff] %v1686_v25   ;;  %v846_v30 = vmul.f32 0.999995, %v1827_v28  ;;  %v878_v31 = vmul.f32 0.999995, %v1859_v29 }
 0x103   : > { %v639_v34 = vpop.f32.mrf.mxu0  ;;  %v767_v35 = vpop.f32.mrf.mxu1  ;;  %v907_v40 = vmax.f32 %v843_v26, 0.0  ;;  %v939_v41 = vmax.f32 %v875_v27, 0.0 }
 0x104   : > { %v910_v36 = vmax.f32 %v846_v30, 0.0  ;;  %v942_v37 = vmax.f32 %v878_v31, 0.0  ;;  %v844_v38 = vmul.f32 0.999995, %v639_v34  ;;  %v876_v39 = vmul.f32 0.999995, %v767_v35 }
 0x105   : > { %v1830_v42 = vpop.f32.mrf.mxu0  ;;  %v1862_v43 = vpop.f32.mrf.mxu1 }
 0x106   : > { %v1621_v44 = vpack.c.bf16 %v910_v36, %v909_v32  ;;  %v1701_v45 = vpack.c.bf16 %v942_v37, %v941_v33  ;;  %v908_v46 = vmax.f32 %v844_v38, 0.0  ;;  %v940_v47 = vmax.f32 %v876_v39, 0.0 }
 0x107   : > { %v849_v48 = vmul.f32 0.999995, %v1830_v42  ;;  %v881_v49 = vmul.f32 0.999995, %v1862_v43  ;;  %v652_v50 = vpop.f32.mrf.mxu0  ;;  %v780_v51 = vpop.f32.mrf.mxu1 }
 0x108   : > { %1741 = vst [vmem:[%s2088_s28 + $0x48] sm:$0xff] %v1621_v44   ;;  %1757 = vst [vmem:[%s2088_s28 + $0xc8] sm:$0xff] %v1701_v45   ;;  %v1616_v52 = vpack.c.bf16 %v908_v46, %v907_v40  ;;  %v1696_v53 = vpack.c.bf16 %v940_v47, %v939_v41  ;;  %v847_v54 = vmul.f32 0.999995, %v652_v50  ;;  %v879_v55 = vmul.f32 0.999995, %v780_v51 }
 0x109   : > { %v1831_v56 = vpop.f32.mrf.mxu0  ;;  %v1863_v57 = vpop.f32.mrf.mxu1  ;;  %v913_v60 = vmax.f32 %v849_v48, 0.0  ;;  %v945_v61 = vmax.f32 %v881_v49, 0.0 }
 0x10a   : > { %1740 = vst [vmem:[%s2088_s28 + $0x40] sm:$0xff] %v1616_v52   ;;  %1756 = vst [vmem:[%s2088_s28 + $0xc0] sm:$0xff] %v1696_v53   ;;  %v850_v58 = vmul.f32 0.999995, %v1831_v56  ;;  %v882_v59 = vmul.f32 0.999995, %v1863_v57 }
 0x10b   : > { %v655_v62 = vpop.f32.mrf.mxu0  ;;  %v783_v63 = vpop.f32.mrf.mxu1  ;;  %v911_v4 = vmax.f32 %v847_v54, 0.0  ;;  %v943_v5 = vmax.f32 %v879_v55, 0.0 }
 0x10c   : > { %v914_v0 = vmax.f32 %v850_v58, 0.0  ;;  %v946_v1 = vmax.f32 %v882_v59, 0.0  ;;  %v848_v2 = vmul.f32 0.999995, %v655_v62  ;;  %v880_v3 = vmul.f32 0.999995, %v783_v63 }
 0x10d   : > { %v1834_v6 = vpop.f32.mrf.mxu0  ;;  %v1866_v7 = vpop.f32.mrf.mxu1 }
 0x10e   : > { %v1631_v8 = vpack.c.bf16 %v914_v0, %v913_v60  ;;  %v1711_v9 = vpack.c.bf16 %v946_v1, %v945_v61  ;;  %v912_v10 = vmax.f32 %v848_v2, 0.0  ;;  %v944_v11 = vmax.f32 %v880_v3, 0.0 }
 0x10f   : > { %v853_v12 = vmul.f32 0.999995, %v1834_v6  ;;  %v885_v13 = vmul.f32 0.999995, %v1866_v7  ;;  %v668_v14 = vpop.f32.mrf.mxu0  ;;  %v796_v15 = vpop.f32.mrf.mxu1 }
 0x110   : > { %1743 = vst [vmem:[%s2088_s28 + $0x58] sm:$0xff] %v1631_v8   ;;  %1759 = vst [vmem:[%s2088_s28 + $0xd8] sm:$0xff] %v1711_v9   ;;  %v1626_v16 = vpack.c.bf16 %v912_v10, %v911_v4  ;;  %v1706_v17 = vpack.c.bf16 %v944_v11, %v943_v5  ;;  %v851_v18 = vmul.f32 0.999995, %v668_v14  ;;  %v883_v19 = vmul.f32 0.999995, %v796_v15 }
 0x111   : > { %v1835_v20 = vpop.f32.mrf.mxu0  ;;  %v1867_v21 = vpop.f32.mrf.mxu1  ;;  %v917_v24 = vmax.f32 %v853_v12, 0.0  ;;  %v949_v25 = vmax.f32 %v885_v13, 0.0 }
 0x112   : > { %1742 = vst [vmem:[%s2088_s28 + $0x50] sm:$0xff] %v1626_v16   ;;  %1758 = vst [vmem:[%s2088_s28 + $0xd0] sm:$0xff] %v1706_v17   ;;  %v854_v22 = vmul.f32 0.999995, %v1835_v20  ;;  %v886_v23 = vmul.f32 0.999995, %v1867_v21 }
 0x113   : > { %v671_v26 = vpop.f32.mrf.mxu0  ;;  %v799_v27 = vpop.f32.mrf.mxu1  ;;  %v915_v32 = vmax.f32 %v851_v18, 0.0  ;;  %v947_v33 = vmax.f32 %v883_v19, 0.0 }
 0x114   : > { %v918_v28 = vmax.f32 %v854_v22, 0.0  ;;  %v950_v29 = vmax.f32 %v886_v23, 0.0  ;;  %v852_v30 = vmul.f32 0.999995, %v671_v26  ;;  %v884_v31 = vmul.f32 0.999995, %v799_v27 }
 0x115   : > { %v1838_v34 = vpop.f32.mrf.mxu0  ;;  %v1870_v35 = vpop.f32.mrf.mxu1 }
 0x116   : > { %v1641_v36 = vpack.c.bf16 %v918_v28, %v917_v24  ;;  %v1721_v37 = vpack.c.bf16 %v950_v29, %v949_v25  ;;  %v916_v38 = vmax.f32 %v852_v30, 0.0  ;;  %v948_v39 = vmax.f32 %v884_v31, 0.0 }
 0x117   : > { %v857_v40 = vmul.f32 0.999995, %v1838_v34  ;;  %v889_v41 = vmul.f32 0.999995, %v1870_v35  ;;  %v684_v42 = vpop.f32.mrf.mxu0  ;;  %v812_v43 = vpop.f32.mrf.mxu1 }
 0x118   : > { %1745 = vst [vmem:[%s2088_s28 + $0x68] sm:$0xff] %v1641_v36   ;;  %1761 = vst [vmem:[%s2088_s28 + $0xe8] sm:$0xff] %v1721_v37   ;;  %v1636_v44 = vpack.c.bf16 %v916_v38, %v915_v32  ;;  %v1716_v45 = vpack.c.bf16 %v948_v39, %v947_v33  ;;  %v855_v46 = vmul.f32 0.999995, %v684_v42  ;;  %v887_v47 = vmul.f32 0.999995, %v812_v43 }
 0x119   : > { %v1839_v48 = vpop.f32.mrf.mxu0  ;;  %v1871_v49 = vpop.f32.mrf.mxu1  ;;  %v921_v52 = vmax.f32 %v857_v40, 0.0  ;;  %v953_v53 = vmax.f32 %v889_v41, 0.0 }
 0x11a   : > { %1744 = vst [vmem:[%s2088_s28 + $0x60] sm:$0xff] %v1636_v44   ;;  %1760 = vst [vmem:[%s2088_s28 + $0xe0] sm:$0xff] %v1716_v45   ;;  %v858_v50 = vmul.f32 0.999995, %v1839_v48  ;;  %v890_v51 = vmul.f32 0.999995, %v1871_v49 }
 0x11b   : > { %v687_v54 = vpop.f32.mrf.mxu0  ;;  %v815_v55 = vpop.f32.mrf.mxu1  ;;  %v919_v60 = vmax.f32 %v855_v46, 0.0  ;;  %v951_v61 = vmax.f32 %v887_v47, 0.0 }
 0x11c   : > { %v922_v56 = vmax.f32 %v858_v50, 0.0  ;;  %v954_v57 = vmax.f32 %v890_v51, 0.0  ;;  %v856_v58 = vmul.f32 0.999995, %v687_v54  ;;  %v888_v59 = vmul.f32 0.999995, %v815_v55 }
 0x11e   : > { %v1651_v62 = vpack.c.bf16 %v922_v56, %v921_v52  ;;  %v1731_v63 = vpack.c.bf16 %v954_v57, %v953_v53  ;;  %v920_v0 = vmax.f32 %v856_v58, 0.0  ;;  %v952_v1 = vmax.f32 %v888_v59, 0.0 }
 0x120   : > { %1747 = vst [vmem:[%s2088_s28 + $0x78] sm:$0xff] %v1651_v62   ;;  %1763 = vst [vmem:[%s2088_s28 + $0xf8] sm:$0xff] %v1731_v63   ;;  %v1646_v2 = vpack.c.bf16 %v920_v0, %v919_v60  ;;  %v1726_v3 = vpack.c.bf16 %v952_v1, %v951_v61 }
 0x122   : > { %1746 = vst [vmem:[%s2088_s28 + $0x70] sm:$0xff] %v1646_v2   ;;  %1762 = vst [vmem:[%s2088_s28 + $0xf0] sm:$0xff] %v1726_v3  }
 0x123 PF: > { %s12_s11 = sadd.s32 1, %s1962_s11   ;;  %s2134_s9 = smov %s1958_s10 }
 0x124   : > { %p9_p5 = scmp.ge.s32.totalorder %s12_s11, 6   ;;  %s2135_s10 = smov %s2137_s12 }
 0x126   :  { %11 = sbr.rel (!%p9_p5) target bundleno = 2 (0x2), region = 61 }

</bundles_post_ra>
